<compile_context>
chip_gen: v5e
topology: v5e:2x2
jax: 0.10.0
libtpu: 0.0.40
codegen_flags: <defaults>
</compile_context>

<pallas_src>
import functools

import jax
import jax.numpy as jnp
from jax.experimental import pallas as pl
from jax.experimental.pallas import tpu as pltpu


def _round_up(x, m):
    return ((x + m - 1) // m) * m


def _largest_divisor_leq(n, cap, multiple_of=1):
    """Largest divisor of n that is <= cap (and a multiple of multiple_of)."""
    cap = int(max(1, min(n, cap)))
    for d in range(cap, 0, -1):
        if n % d == 0 and d % multiple_of == 0:
            return d
    return None


def _pick_c_tile(C, cap):
    if C <= cap:
        return C                                  # full dim: always legal
    d = _largest_divisor_leq(C, cap, multiple_of=8)   # sublane-friendly tile
    if d is not None:
        return d
    # Fallback: take the whole C axis (legal block == full dim); only hit for
    # pathological channel counts with no multiple-of-8 divisor <= cap.
    return C


# --------------------------- stage 1: channel reduce ------------------------

def _pool_reduce_kernel(x_ref, sum_ref, max_ref):
    """Reduce sum/max over channels on a lane-dense (NB, C_TILE, T*V) block.

    x_ref   : (NB, C_TILE, T*V) block of x viewed as (N, C, T*V)
    sum_ref : (NB, 1, T*V) f32 running channel-sum (output-resident accumulator)
    max_ref : (NB, 1, T*V) f32 running channel-max
    """
    c = pl.program_id(1)

    xb = x_ref[...].astype(jnp.float32)               # f32 accumulation
    part_s = jnp.sum(xb, axis=1, keepdims=True)       # (NB, 1, T*V)
    part_m = jnp.max(xb, axis=1, keepdims=True)       # (NB, 1, T*V)

    @pl.when(c == 0)
    def _():
        sum_ref[...] = part_s
        max_ref[...] = part_m

    @pl.when(c > 0)
    def _():
        sum_ref[...] = sum_ref[...] + part_s
        max_ref[...] = jnp.maximum(max_ref[...], part_m)


# ----------------- stage 2: V-pool + 9-tap temporal conv --------------------

def _frame_conv_kernel(s_ref, m_ref, w_ref, b_ref, o_ref, pad_a, pad_m, *,
                       kt, pad, inv_cv):
    """Pool over V and apply Conv2d(2, 1, (kt, 1), padding=(pad, 0)).

    s_ref, m_ref : (NB2, T, V) channel-summed / channel-maxed stats
    w_ref        : (kt, 2) SMEM taps; column 0 = avg channel, 1 = max channel
    b_ref        : (1,)    SMEM bias
    o_ref        : (NB2, T, 1) output block
    pad_a, pad_m : VMEM scratch (NB2, T + 2*pad, 1) zero-padded temporal rows
    """
    nb2 = o_ref.shape[0]
    T = o_ref.shape[1]

    avg = jnp.sum(s_ref[...], axis=-1, keepdims=True) * inv_cv   # (NB2, T, 1)
    mx = jnp.max(m_ref[...], axis=-1, keepdims=True)             # (NB2, T, 1)

    # Zero only the 2*pad halo rows; the interior is fully overwritten every
    # step (correct even when the batch axis is split across TensorCores).
    if pad > 0:
        zero_halo = jnp.zeros((nb2, pad, 1), jnp.float32)
        pad_a[:, pl.ds(0, pad), :] = zero_halo
        pad_a[:, pl.ds(pad + T, pad), :] = zero_halo
        pad_m[:, pl.ds(0, pad), :] = zero_halo
        pad_m[:, pl.ds(pad + T, pad), :] = zero_halo
    pad_a[:, pl.ds(pad, T), :] = avg
    pad_m[:, pl.ds(pad, T), :] = mx

    # 9-tap / 2-channel conv as VPU broadcast-FMAs; accumulator initialised
    # with the k == 0 term + bias (no zeros materialisation).
    acc = (pad_a[:, pl.ds(0, T), :] * w_ref[0, 0]
           + pad_m[:, pl.ds(0, T), :] * w_ref[0, 1]
           + b_ref[0])
    for k in range(1, kt):
        acc = (acc
               + pad_a[:, pl.ds(k, T), :] * w_ref[k, 0]
               + pad_m[:, pl.ds(k, T), :] * w_ref[k, 1])

    o_ref[...] = acc


# --------------------------------- wrapper ----------------------------------

def frame_att(x_nchw, w_conv, b_conv, *, block_target_bytes=2 << 20):
    """Frame_Att forward.

    x_nchw : (N, C, T, V) activations
    w_conv : (1, 2, kt, 1) torch Conv2d weight layout
    b_conv : (1,) conv bias
    returns (N, 1, T, 1) float32
    """
    N, C, T, V = map(int, x_nchw.shape)
    kt = int(w_conv.shape[2])
    pad = (kt - 1) // 2
    TV = T * V
    itemsize = jnp.dtype(x_nchw.dtype).itemsize

    # torch (1, 2, kt, 1) -> (kt, 2); column 0 applies to avg, column 1 to max.
    w = jnp.asarray(w_conv, jnp.float32)[0, :, :, 0].T
    b = jnp.asarray(b_conv, jnp.float32).reshape(1)

    # ---- stage 1: channel reduction over lane-dense (N, C, T*V) view -------
    x3 = x_nchw.reshape(N, C, TV)                      # free contiguous view
    row_bytes = _round_up(TV, 128) * itemsize          # lane-padded per-channel row
    c_tile = _pick_c_tile(C, max(1, block_target_bytes // row_bytes))
    if c_tile == C:
        nb = _largest_divisor_leq(
            N, max(1, block_target_bytes // (C * row_bytes))) or 1
    else:
        nb = 1

    in_block_bytes = nb * _round_up(c_tile, 8) * _round_up(TV, 128) * itemsize
    stat_block_bytes = nb * 8 * _round_up(TV, 128) * 4
    vmem_limit1 = int(min(64 << 20, max(16 << 20,
                                        3 * in_block_bytes
                                        + 6 * stat_block_bytes + (2 << 20))))

    sum_c, max_c = pl.pallas_call(
        _pool_reduce_kernel,
        out_shape=(jax.ShapeDtypeStruct((N, 1, TV), jnp.float32),
                   jax.ShapeDtypeStruct((N, 1, TV), jnp.float32)),
        grid_spec=pltpu.PrefetchScalarGridSpec(
            num_scalar_prefetch=0,
            grid=(N // nb, C // c_tile),
            in_specs=[pl.BlockSpec((nb, c_tile, TV), lambda n, c: (n, c, 0))],
            out_specs=(pl.BlockSpec((nb, 1, TV), lambda n, c: (n, 0, 0)),
                       pl.BlockSpec((nb, 1, TV), lambda n, c: (n, 0, 0))),
        ),
        compiler_params=pltpu.CompilerParams(
            dimension_semantics=("parallel", "arbitrary"),
            vmem_limit_bytes=vmem_limit1),
    )(x3)

    # ---- stage 2: V pooling + temporal conv on the tiny stats --------------
    s_view = sum_c.reshape(N, T, V)    # free HBM re-view: per-t groups of V
    m_view = max_c.reshape(N, T, V)

    nb2 = _largest_divisor_leq(
        N, max(1, block_target_bytes // (_round_up(T, 8) * 128 * 4))) or 1

    kernel2 = functools.partial(_frame_conv_kernel, kt=kt, pad=pad,
                                inv_cv=1.0 / float(C * V))
    out = pl.pallas_call(
        kernel2,
        out_shape=jax.ShapeDtypeStruct((N, T, 1), jnp.float32),
        grid_spec=pltpu.PrefetchScalarGridSpec(
            num_scalar_prefetch=0,
            grid=(N // nb2,),
            in_specs=[
                pl.BlockSpec((nb2, T, V), lambda n: (n, 0, 0)),
                pl.BlockSpec((nb2, T, V), lambda n: (n, 0, 0)),
                pl.BlockSpec(memory_space=pltpu.MemorySpace.SMEM),   # conv taps
                pl.BlockSpec(memory_space=pltpu.MemorySpace.SMEM),   # conv bias
            ],
            out_specs=pl.BlockSpec((nb2, T, 1), lambda n: (n, 0, 0)),
            scratch_shapes=[pltpu.VMEM((nb2, T + 2 * pad, 1), jnp.float32),
                            pltpu.VMEM((nb2, T + 2 * pad, 1), jnp.float32)],
        ),
        compiler_params=pltpu.CompilerParams(
            dimension_semantics=("parallel",),
            vmem_limit_bytes=16 << 20),
    )(s_view, m_view, w, b)

    return out.reshape(N, 1, T, 1)


# -------------------- pure-JAX reference for correctness check --------------

def ref_frame_att(x, w_conv, b_conv):
    N, C, T, V = x.shape
    kt = w_conv.shape[2]
    pad = (kt - 1) // 2
    xt = jnp.transpose(x, (0, 2, 1, 3))                  # (N, T, C, V)
    avg = jnp.mean(xt, axis=(2, 3))                      # (N, T)
    mx = jnp.max(xt, axis=(2, 3))                        # (N, T)
    stats = jnp.stack([avg, mx], axis=1)                 # (N, 2, T): ch0=avg, ch1=max
    sp = jnp.pad(stats, ((0, 0), (0, 0), (pad, pad)))
    w = w_conv[0, :, :, 0]                               # (2, kt)
    out = b_conv[0] + sum(
        w[0, k] * sp[:, 0, k:k + T] + w[1, k] * sp[:, 1, k:k + T]
        for k in range(kt))
    return out[:, None, :, None]                         # (N, 1, T, 1)


if __name__ == "__main__":
    key = jax.random.PRNGKey(0)

    # -- test 1: small shapes consistent with the module, single-block path --
    N, C, T, V = 2, 8, 16, 8
    kt = 9
    kx, kw, kb, key = (*jax.random.split(key, 3), key)
    x = jax.random.normal(kx, (N, C, T, V), jnp.float32)
    w_conv = (1.0 / jnp.sqrt(2.0 * kt)) * jax.random.normal(
        kw, (1, 2, kt, 1), jnp.float32)
    b_conv = 0.1 * jax.random.normal(kb, (1,), jnp.float32)

    out = jax.block_until_ready(frame_att(x, w_conv, b_conv))
    ref = ref_frame_att(x, w_conv, b_conv)
    assert out.shape == (N, 1, T, 1), out.shape
    assert jnp.allclose(out, ref, atol=1e-4, rtol=1e-4), \
        float(jnp.max(jnp.abs(out - ref)))

    # -- test 2: exercises the tiled-C accumulation path (C_TILE < C) --------
    N2, C2, T2, V2 = 2, 16, 24, 5
    k2x, k2w, k2b = jax.random.split(jax.random.PRNGKey(0), 3)
    x2 = jax.random.normal(k2x, (N2, C2, T2, V2), jnp.float32)
    w2 = (1.0 / jnp.sqrt(2.0 * kt)) * jax.random.normal(
        k2w, (1, 2, kt, 1), jnp.float32)
    b2 = 0.1 * jax.random.normal(k2b, (1,), jnp.float32)

    out2 = jax.block_until_ready(
        frame_att(x2, w2, b2, block_target_bytes=4096))   # forces C_TILE=8 < C
    ref2 = ref_frame_att(x2, w2, b2)
    assert out2.shape == (N2, 1, T2, 1), out2.shape
    assert jnp.allclose(out2, ref2, atol=1e-4, rtol=1e-4), \
        float(jnp.max(jnp.abs(out2 - ref2)))

    print("KERNEL_OK")
</pallas_src>

<mosaic_0001>
module attributes {stable_mosaic.version = 11 : i64} {
  func.func @_pool_reduce_kernel(%arg0: i32, %arg1: i32, %arg2: memref<2x8x128xf32, #tpu.memory_space<vmem>>, %arg3: memref<2x1x128xf32, #tpu.memory_space<vmem>>, %arg4: memref<2x1x128xf32, #tpu.memory_space<vmem>>) attributes {dimension_semantics = [#tpu.dimension_semantics<parallel>, #tpu.dimension_semantics<arbitrary>], iteration_bounds = array<i64: 1, 1>, scalar_prefetch = 0 : i64, scratch_operands = 0 : i64, tpu.core_type = #tpu.core_type<tc>, window_params = [{transform_indices = @transform_0, window_bounds = array<i64: 2, 8, 128>}, {transform_indices = @transform_1, window_bounds = array<i64: 2, 1, 128>}, {transform_indices = @transform_2, window_bounds = array<i64: 2, 1, 128>}]} {
    %c0 = arith.constant 0 : index
    %c0_0 = arith.constant 0 : index
    %c0_1 = arith.constant 0 : index
    %0 = vector.load %arg2[%c0, %c0_0, %c0_1] : memref<2x8x128xf32, #tpu.memory_space<vmem>>, vector<2x8x128xf32>
    %cst = arith.constant dense<0.000000e+00> : vector<2x128xf32>
    %1 = vector.multi_reduction <add>, %0, %cst [1] : vector<2x8x128xf32> to vector<2x128xf32>
    %2 = vector.shape_cast %1 : vector<2x128xf32> to vector<2x1x128xf32>
    %cst_2 = arith.constant dense<0xFF800000> : vector<2x128xf32>
    %3 = vector.multi_reduction <maximumf>, %0, %cst_2 [1] : vector<2x8x128xf32> to vector<2x128xf32>
    %4 = vector.shape_cast %3 : vector<2x128xf32> to vector<2x1x128xf32>
    %c0_i32 = arith.constant 0 : i32
    %5 = arith.cmpi eq, %arg1, %c0_i32 : i32
    %6 = arith.extui %5 : i1 to i32
    %c0_i32_3 = arith.constant 0 : i32
    %7 = arith.cmpi ne, %6, %c0_i32_3 : i32
    scf.if %7 {
      %c0_6 = arith.constant 0 : index
      %c0_7 = arith.constant 0 : index
      %c0_8 = arith.constant 0 : index
      %11 = vector.load %arg3[%c0_6, %c0_7, %c0_8] : memref<2x1x128xf32, #tpu.memory_space<vmem>>, vector<2x1x128xf32>
      tpu.vector_store %arg3[%c0_6, %c0_7, %c0_8], %2 {strides = array<i32>} : memref<2x1x128xf32, #tpu.memory_space<vmem>>, vector<2x1x128xf32>,
      %c0_9 = arith.constant 0 : index
      %c0_10 = arith.constant 0 : index
      %c0_11 = arith.constant 0 : index
      %12 = vector.load %arg4[%c0_9, %c0_10, %c0_11] : memref<2x1x128xf32, #tpu.memory_space<vmem>>, vector<2x1x128xf32>
      tpu.vector_store %arg4[%c0_9, %c0_10, %c0_11], %4 {strides = array<i32>} : memref<2x1x128xf32, #tpu.memory_space<vmem>>, vector<2x1x128xf32>,
    } else {
    }
    %c0_i32_4 = arith.constant 0 : i32
    %8 = arith.cmpi sgt, %arg1, %c0_i32_4 : i32
    %9 = arith.extui %8 : i1 to i32
    %c0_i32_5 = arith.constant 0 : i32
    %10 = arith.cmpi ne, %9, %c0_i32_5 : i32
    scf.if %10 {
      %c0_6 = arith.constant 0 : index
      %c0_7 = arith.constant 0 : index
      %c0_8 = arith.constant 0 : index
      %11 = vector.load %arg3[%c0_6, %c0_7, %c0_8] : memref<2x1x128xf32, #tpu.memory_space<vmem>>, vector<2x1x128xf32>
      %12 = arith.addf %11, %2 : vector<2x1x128xf32>
      %c0_9 = arith.constant 0 : index
      %c0_10 = arith.constant 0 : index
      %c0_11 = arith.constant 0 : index
      %13 = vector.load %arg3[%c0_9, %c0_10, %c0_11] : memref<2x1x128xf32, #tpu.memory_space<vmem>>, vector<2x1x128xf32>
      tpu.vector_store %arg3[%c0_9, %c0_10, %c0_11], %12 {strides = array<i32>} : memref<2x1x128xf32, #tpu.memory_space<vmem>>, vector<2x1x128xf32>,
      %c0_12 = arith.constant 0 : index
      %c0_13 = arith.constant 0 : index
      %c0_14 = arith.constant 0 : index
      %14 = vector.load %arg4[%c0_12, %c0_13, %c0_14] : memref<2x1x128xf32, #tpu.memory_space<vmem>>, vector<2x1x128xf32>
      %15 = arith.maximumf %14, %4 : vector<2x1x128xf32>
      %c0_15 = arith.constant 0 : index
      %c0_16 = arith.constant 0 : index
      %c0_17 = arith.constant 0 : index
      %16 = vector.load %arg4[%c0_15, %c0_16, %c0_17] : memref<2x1x128xf32, #tpu.memory_space<vmem>>, vector<2x1x128xf32>
      tpu.vector_store %arg4[%c0_15, %c0_16, %c0_17], %15 {strides = array<i32>} : memref<2x1x128xf32, #tpu.memory_space<vmem>>, vector<2x1x128xf32>,
    } else {
    }
    return
  }
  func.func @transform_0(%arg0: i32, %arg1: i32) -> (i32, i32, i32) {
    %c0_i32 = arith.constant 0 : i32
    %c0_i32_0 = arith.constant 0 : i32
    return %arg0, %arg1, %c0_i32 : i32, i32, i32
  }
  func.func @transform_1(%arg0: i32, %arg1: i32) -> (i32, i32, i32) {
    %c0_i32 = arith.constant 0 : i32
    %c0_i32_0 = arith.constant 0 : i32
    %c0_i32_1 = arith.constant 0 : i32
    return %arg0, %c0_i32, %c0_i32_0 : i32, i32, i32
  }
  func.func @transform_2(%arg0: i32, %arg1: i32) -> (i32, i32, i32) {
    %c0_i32 = arith.constant 0 : i32
    %c0_i32_0 = arith.constant 0 : i32
    %c0_i32_1 = arith.constant 0 : i32
    return %arg0, %c0_i32, %c0_i32_0 : i32, i32, i32
  }
}

</mosaic_0001>

<bundles_post_ra>
// kernel: tpu_custom_call.1
= control target key start
LH: loop header
LB: loop body
LE: loop exit
PB: predicated region body
PF: predicated region fallthrough
CT: control target
= control target key end

     0   :  { %8 = vsyncpa [#allocation3], 0  ;;  %s231_s0 = inlined_call_operand.hbm [shape: f32[2,8,128], index: 0, kind: input, shape index: {}]   ;;  %s232_s1 = inlined_call_operand.hbm [shape: f32[2,1,128], index: 1, kind: output, shape index: {0}]   ;;  %s233_s2 = inlined_call_operand.hbm [shape: f32[2,1,128], index: 2, kind: output, shape index: {1}]  }
   0x1   :  { %9 = vsyncpa [#allocation4], 0 }
   0x2   :  { %10 = vsyncpa [#allocation7], 0  ;;  %s15_s11 = sshll.u32 %s231_s0, 4  ;;  %s200_s12 = smov [#allocation2]   ;;  %s16_s11 = int_to_ptr.hbm [resolvable:$true] %s15_s11 }
   0x3   :  { %s17_s13 = sshll.u32 %s200_s12, 4  ;;  %s201_s14 = smov 128   ;;  %s18_s13 = int_to_ptr.vmem [resolvable:$true] %s17_s13 }
   0x4   :  { %s202_s15 = smov 8  }
   0x5   :  { %23 = dma.hbm_to_vmem [thread:$0]  %s16_s11, 256, %s18_s13, [#allocation3], %s201_s14, %s201_s14, %s202_s15  }
   0x6   :  { %194 = dma.done.wait [#allocation3], 256  }
   0x7   :  { %195 = vsyncadd [#allocation3], 4294967040  ;;  %v28_v0 = vld [vmem:[#allocation2] sm:$0xff]  ;;  %v29_v1 = vld [vmem:[#allocation2 + $0x8] sm:$0xff]  ;;  %s203_s0 = smov [#allocation5]   ;;  %s84_s19 = sshll.u32 %s232_s1, 4  ;;  %s85_s19 = int_to_ptr.hbm [resolvable:$true] %s84_s19 }
   0x8   :  { %v30_v2 = vrot.slane %v28_v0, 4  ;;  %v36_v3 = vrot.slane %v29_v1, 4  ;;  %s82_s16 = sshll.u32 %s203_s0, 4  ;;  %s204_s20 = smov [#allocation6]   ;;  %s83_s16 = int_to_ptr.vmem [resolvable:$true] %s82_s16 }
   0x9   :  { %s95_s21 = sshll.u32 %s204_s20, 4  ;;  %s97_s24 = sshll.u32 %s233_s2, 4  ;;  %s96_s21 = int_to_ptr.vmem [resolvable:$true] %s95_s21  ;;  %s98_s24 = int_to_ptr.hbm [resolvable:$true] %s97_s24 }
   0xa   :  { %v31_v4 = vadd.f32 %v30_v2, %v28_v0  ;;  %v37_v5 = vadd.f32 %v36_v3, %v29_v1  ;;  %v43_v6 = vmax.f32 %v28_v0, %v30_v2  ;;  %v49_v7 = vmax.f32 %v29_v1, %v36_v3  ;;  %s205_s1 = smov 16   ;;  %s206_s25 = smov 1  }
   0xc   :  { %v32_v8 = vrot.slane %v31_v4, 2  ;;  %v38_v9 = vrot.slane %v37_v5, 2  ;;  %v44_v10 = vrot.slane %v43_v6, 2  ;;  %v50_v11 = vrot.slane %v49_v7, 2 }
   0xe   :  { %v33_v12 = vadd.f32 %v32_v8, %v31_v4  ;;  %v39_v13 = vadd.f32 %v38_v9, %v37_v5  ;;  %v45_v14 = vmax.f32 %v43_v6, %v44_v10  ;;  %v51_v15 = vmax.f32 %v49_v7, %v50_v11 }
  0x10   :  { %v34_v16 = vrot.slane %v33_v12, 1  ;;  %v40_v17 = vrot.slane %v39_v13, 1  ;;  %v46_v18 = vrot.slane %v45_v14, 1  ;;  %v52_v19 = vrot.slane %v51_v15, 1 }
  0x12   :  { %v35_v20 = vadd.f32 %v34_v16, %v33_v12  ;;  %v41_v21 = vadd.f32 %v40_v17, %v39_v13  ;;  %v47_v22 = vmax.f32 %v45_v14, %v46_v18  ;;  %v53_v23 = vmax.f32 %v51_v15, %v52_v19 }
  0x14   :  { %58 = vst [vmem:[#allocation5] sm:$0x1] %v35_v20 }
  0x15   :  { %59 = vst [vmem:[#allocation5 + $0x1] sm:$0x1] %v41_v21 }
  0x16   :  { %60 = vst [vmem:[#allocation6] sm:$0x1] %v47_v22  ;;  %90 = dma.vmem_to_hbm [thread:$0]  %s83_s16, 32, %s85_s19, [#allocation4], %s205_s1, %s205_s1, %s206_s25  }
  0x17   :  { %61 = vst [vmem:[#allocation6 + $0x1] sm:$0x1] %v53_v23 }
  0x18   :  { %103 = dma.vmem_to_hbm [thread:$0]  %s96_s21, 32, %s98_s24, [#allocation7], %s205_s1, %s205_s1, %s206_s25  }
  0x19   :  { %196 = dma.done.wait [#allocation4], 32  }
  0x1a   :  { %197 = vsyncadd [#allocation4], 4294967264 }
  0x1b   :  { %198 = dma.done.wait [#allocation7], 32  }
  0x1c   :  { %199 = vsyncadd [#allocation7], 4294967264 }
  0x1d   :  { %112 = vsyncpa [#allocation3], 1 }
  0x1e   :  { %113 = vsyncpa [#allocation4], 1 }
  0x1f   :  { %114 = vsyncpa [#allocation7], 1 }

</bundles_post_ra>
